<compile_context>
chip_gen: v7x
topology: tpu7x:2x2x1
jax: 0.10.0
libtpu: 0.0.40
codegen_flags: <defaults>
</compile_context>

<pallas_src>
import jax
import jax.numpy as jnp
from jax.experimental import pallas as pl
from jax.experimental.pallas import tpu as pltpu

# Hyper-parameters from L0GateLayer2d.__init__ defaults (fix_temp=True).
BETA = 2.0 / 3.0   # temp
GAMMA = -0.1
ZETA = 1.1


def _gate_mul_kernel(x_ref, mask_ref, o_ref):
    """out[r, s] = x[r, s] * mask[r, 0]  (mask broadcast across the lane dim).

    x_ref:    (TILE_R, S_pad)  activation rows (row = one (b, c) pair)
    mask_ref: (TILE_R, 1)      per-(b, c) gate value
    o_ref:    (TILE_R, S_pad)  gated output
    """
    o_ref[...] = x_ref[...] * mask_ref[...]


def _hard_concrete_mask(loc, u):
    """Stochastic hard-concrete gate, computed as plain (fused) JAX."""
    # s = sigmoid((log(u) - log(1 - u) + loc) / temp)
    s = jax.nn.sigmoid((jnp.log(u) - jnp.log1p(-u) + loc[None, :]) / BETA)
    # stretch then hard-sigmoid clamp
    s = s * (ZETA - GAMMA) + GAMMA
    return jnp.clip(s, 0.0, 1.0)                      # (B, C)


def l0_gate_forward(x, loc, u, *, max_tile_rows=1024):
    """x: (B, C, H, W), loc: (C,), u: (B, C) uniform(0,1) samples."""
    B, C, H, W = x.shape
    assert loc.shape == (C,)
    assert u.shape == (B, C)

    mask = _hard_concrete_mask(loc, u)                # (B, C), tiny XLA op

    R, S = B * C, H * W
    itemsize = jnp.dtype(x.dtype).itemsize

    # Lane-dense output: pad the spatial (last) dim to a multiple of 128.
    S_pad = pl.cdiv(S, 128) * 128

    # Row tile: multiple of 8 (f32 sublane), capped so
    # (x tile + out tile) * 2 double-buffers <= ~32 MiB (fits every generation).
    vmem_budget = 32 * 1024 * 1024
    rows_by_vmem = vmem_budget // (4 * S_pad * itemsize)
    tile_r = int(min(max_tile_rows, rows_by_vmem, pl.cdiv(R, 8) * 8))
    tile_r = max(8, (tile_r // 8) * 8)

    R_pad = pl.cdiv(R, tile_r) * tile_r

    x2 = jnp.pad(x.reshape(R, S), ((0, R_pad - R), (0, S_pad - S)))
    mask2 = jnp.pad(mask.reshape(R, 1), ((0, R_pad - R), (0, 0)))

    out2 = pl.pallas_call(
        _gate_mul_kernel,
        out_shape=jax.ShapeDtypeStruct((R_pad, S_pad), x.dtype),
        grid_spec=pl.GridSpec(
            grid=(R_pad // tile_r,),
            in_specs=[
                pl.BlockSpec((tile_r, S_pad), lambda i: (i, 0)),
                pl.BlockSpec((tile_r, 1), lambda i: (i, 0)),
            ],
            out_specs=pl.BlockSpec((tile_r, S_pad), lambda i: (i, 0)),
        ),
        compiler_params=pltpu.CompilerParams(
            dimension_semantics=("parallel",),        # megacore / 2-TC sharding
            vmem_limit_bytes=48 * 1024 * 1024,        # headroom over ~32 MiB tiles
        ),
        cost_estimate=pl.CostEstimate(
            flops=R_pad * S_pad,
            transcendentals=0,
            bytes_accessed=2 * R_pad * S_pad * itemsize + R_pad * itemsize,
        ),
    )(x2, mask2)

    return out2[:R, :S].reshape(B, C, H, W)


def l0_gate_forward_ref(x, loc, u):
    """Pure-JAX reference mirroring the PyTorch forward()."""
    mask = _hard_concrete_mask(loc, u)                # (B, C)
    return x * mask[:, :, None, None]


if __name__ == "__main__":
    key = jax.random.PRNGKey(0)
    k_x, k_loc, k_u = jax.random.split(key, 3)

    B, C, H, W = 2, 4, 16, 16

    # Deterministic parameter init: loc ~ N(loc_mean=1, loc_sd=0.01)
    loc = 1.0 + 0.01 * jax.random.normal(k_loc, (C,), dtype=jnp.float32)

    # Uniform noise for the stochastic gate (torch's uniform_()); clipped away
    # from {0, 1} for numerical safety of log(u) / log1p(-u).
    u = jax.random.uniform(
        k_u, (B, C), dtype=jnp.float32, minval=1e-6, maxval=1.0 - 1e-6
    )

    x = jax.random.normal(k_x, (B, C, H, W), dtype=jnp.float32)

    out = jax.block_until_ready(l0_gate_forward(x, loc, u))
    ref = jax.block_until_ready(l0_gate_forward_ref(x, loc, u))

    assert out.shape == (B, C, H, W)
    assert jnp.allclose(out, ref, atol=1e-6, rtol=1e-6), "mismatch vs reference"

    print("KERNEL_OK")
</pallas_src>

<mosaic_0001>
module attributes {stable_mosaic.version = 11 : i64} {
  func.func @_gate_mul_kernel(%arg0: i32, %arg1: memref<8x256xf32, #tpu.memory_space<vmem>>, %arg2: memref<8x1xf32, #tpu.memory_space<vmem>>, %arg3: memref<8x256xf32, #tpu.memory_space<vmem>>) attributes {dimension_semantics = [#tpu.dimension_semantics<parallel>], iteration_bounds = array<i64: 1>, scalar_prefetch = 0 : i64, scratch_operands = 0 : i64, tpu.core_type = #tpu.core_type<tc>, window_params = [{transform_indices = @transform_0, window_bounds = array<i64: 8, 256>}, {transform_indices = @transform_1, window_bounds = array<i64: 8, 1>}, {transform_indices = @transform_2, window_bounds = array<i64: 8, 256>}]} {
    %c0 = arith.constant 0 : index
    %c0_0 = arith.constant 0 : index
    %0 = vector.load %arg1[%c0, %c0_0] : memref<8x256xf32, #tpu.memory_space<vmem>>, vector<8x256xf32>
    %c0_1 = arith.constant 0 : index
    %c0_2 = arith.constant 0 : index
    %1 = vector.load %arg2[%c0_1, %c0_2] : memref<8x1xf32, #tpu.memory_space<vmem>>, vector<8x1xf32>
    %2 = vector.broadcast %1 : vector<8x1xf32> to vector<8x256xf32>
    %3 = arith.mulf %0, %2 : vector<8x256xf32>
    %c0_3 = arith.constant 0 : index
    %c0_4 = arith.constant 0 : index
    %4 = vector.load %arg3[%c0_3, %c0_4] : memref<8x256xf32, #tpu.memory_space<vmem>>, vector<8x256xf32>
    tpu.vector_store %arg3[%c0_3, %c0_4], %3 {strides = array<i32>} : memref<8x256xf32, #tpu.memory_space<vmem>>, vector<8x256xf32>,
    return
  }
  func.func @transform_0(%arg0: i32) -> (i32, i32) {
    %c0_i32 = arith.constant 0 : i32
    %c0_i32_0 = arith.constant 0 : i32
    return %arg0, %c0_i32 : i32, i32
  }
  func.func @transform_1(%arg0: i32) -> (i32, i32) {
    %c0_i32 = arith.constant 0 : i32
    %c0_i32_0 = arith.constant 0 : i32
    return %arg0, %c0_i32 : i32, i32
  }
  func.func @transform_2(%arg0: i32) -> (i32, i32) {
    %c0_i32 = arith.constant 0 : i32
    %c0_i32_0 = arith.constant 0 : i32
    return %arg0, %c0_i32 : i32, i32
  }
}

</mosaic_0001>

<bundles_post_ra>
// kernel: tpu_custom_call.1
= control target key start
LH: loop header
LB: loop body
LE: loop exit
PB: predicated region body
PF: predicated region fallthrough
CT: control target
= control target key end

     0   :  { %7 = vsyncpa [#allocation3], 0  ;;  %s148_s0 = inlined_call_operand.hbm [shape: f32[8,256], index: 0, kind: input, shape index: {}]   ;;  %s149_s1 = inlined_call_operand.vmem [shape: f32[8,1], index: 1, kind: input, shape index: {}]   ;;  %s150_s2 = inlined_call_operand.hbm [shape: f32[8,256], index: 2, kind: output, shape index: {}]  }
   0x1   :  { %8 = vsyncpa [#allocation4], 0  ;;  %s103_s9 = smov [#allocation2]   ;;  %s55_s13 = scalar_lea.hbm %s148_s0, 256 }
   0x2   :  { %s15_s10 = sshll.u32 %s103_s9, 4  ;;  %p56_p0 = scmp.ne.s32.totalorder %s148_s0, %s55_s13  ;;  %s16_s10 = int_to_ptr.vmem [resolvable:$true] %s15_s10 }
   0x3   :  { %p59_p1 = scmp.lt.u32.totalorder %s55_s13, %s148_s0 }
   0x5   :  { %p61_p2 = pnand %p59_p1, %p56_p0 }
   0x7   :  { %64 = shalt.err (!%p61_p2)
}
   0x8   :  { %s65_s18 = scalar_lea.vmem %s16_s10, 256  ;;  %p70_p4 = scmp.lt.s32.totalorder %s16_s10, %s16_s10 }
   0x9   :  { %p66_p3 = scmp.ne.s32.totalorder %s16_s10, %s65_s18  ;;  %p71_p5 = scmp.lt.s32.totalorder %s65_s18, %s65_s18 }
   0xb   :  { %p72_p6 = por %p71_p5, %p70_p4 }
   0xd   :  { %p73_p7 = pnand %p72_p6, %p66_p3 }
   0xf   :  { %76 = shalt.err (!%p73_p7)
}
  0x10   :  { %18 = dma.hbm_to_vmem [thread:$0]  %s148_s0, 256, %s16_s10, [#allocation3]  }
  0x11   :  { %99 = dma.done.wait [#allocation3], 256  }
  0x12   :  { %100 = vsyncadd [#allocation3], 4294967040  ;;  %v104_v0 = vmov 0   ;;  %v26_v1 = vld [vmem:[%s149_s1] sm:$0xff]  ;;  %v25_v3 = vld [vmem:[#allocation2 + $0x8] sm:$0xff]  ;;  %s105_s23 = smov [#allocation5]  }
  0x13   :  { %54 = vset.pattern.permute.xlu0 %v104_v0  ;;  %v24_v2 = vld [vmem:[#allocation2] sm:$0xff]  ;;  %s42_s24 = sshll.u32 %s105_s23, 4  ;;  %s43_s24 = int_to_ptr.vmem [resolvable:$true] %s42_s24 }
  0x14   :  { %29 = vperm.xlu0 %54, %v26_v1   ;;  %s77_s0 = scalar_lea.vmem %s43_s24, 256  ;;  %p82_p9 = scmp.lt.s32.totalorder %s43_s24, %s43_s24 }
  0x15   :  { %p78_p8 = scmp.ne.s32.totalorder %s43_s24, %s77_s0  ;;  %p83_p10 = scmp.lt.s32.totalorder %s77_s0, %s77_s0 }
  0x17   :  { %p84_p11 = por %p83_p10, %p82_p9 }
  0x19   :  { %p85_p12 = pnand %p84_p11, %p78_p8 }
  0x93   :  { %v30_v4 = vpop.permute.xlu0 %29 }
  0x94   :  { %v32_v5 = vmul.f32 %v30_v4, %v24_v2  ;;  %v33_v6 = vmul.f32 %v30_v4, %v25_v3 }
  0x96   :  { %34 = vst [vmem:[#allocation5] sm:$0xff] %v32_v5  ;;  %35 = vst [vmem:[#allocation5 + $0x8] sm:$0xff] %v33_v6 }
  0x97   :  { %88 = shalt.err (!%p85_p12)
}
  0x98   :  { %s89_s26 = scalar_lea.hbm %s150_s2, 256 }
  0x99   :  { %p90_p13 = scmp.ne.s32.totalorder %s150_s2, %s89_s26  ;;  %p93_p0 = scmp.lt.u32.totalorder %s89_s26, %s150_s2 }
  0x9b   :  { %p95_p1 = pnand %p93_p0, %p90_p13 }
  0x9d   :  { %98 = shalt.err (!%p95_p1)
}
  0x9e   :  { %45 = dma.vmem_to_hbm [thread:$0]  %s43_s24, 256, %s150_s2, [#allocation4]  }
  0x9f   :  { %101 = dma.done.wait [#allocation4], 256  }
  0xa0   :  { %102 = vsyncadd [#allocation4], 4294967040 }
  0xa1   :  { %49 = vsyncpa [#allocation3], 1 }
  0xa2   :  { %50 = vsyncpa [#allocation4], 1 }

</bundles_post_ra>
